<compile_context>
chip_gen: v6e
topology: v6e:2x2x1
jax: 0.10.0
libtpu: 0.0.40
codegen_flags: <defaults>
</compile_context>

<pallas_src>
import jax
import jax.numpy as jnp
from jax.experimental import pallas as pl
from jax.experimental.pallas import tpu as pltpu

_LANE_COLS = 1024          # lane-dense last dim (multiple of 128)
_MAX_TILE_ROWS = 512       # 512 x 1024 x 4B = 2 MiB per f32 block


def _make_trunc_rev_sigmoid_kernel(eps):
    eps = float(eps)
    lo = eps
    hi = 1.0 - eps

    def kernel(x_ref, o_ref):
        # Upcast to f32 for the clamp/log (precision + v5e has no bf16 VPU/EUP).
        x = x_ref[...].astype(jnp.float32)
        xc = jnp.clip(x, lo, hi)
        o_ref[...] = jnp.log(xc / (1.0 - xc)).astype(o_ref.dtype)

    return kernel


def trunc_rev_sigmoid_pallas(x, eps=0.01):
    """Elementwise trunc_rev_sigmoid over an arbitrary-shaped float array."""
    orig_shape = x.shape
    orig_dtype = x.dtype

    n = x.size
    if n == 0:
        return x

    flat = x.reshape(-1)

    cols = _LANE_COLS
    # Rows needed to hold all elements, rounded up to a multiple of 8 (sublane).
    rows = -(-n // cols)
    rows = ((rows + 7) // 8) * 8

    # Tile rows: cap the block at ~2 MiB (f32); small inputs use a single block
    # that is still far below any VMEM limit.
    tile_rows = _MAX_TILE_ROWS if rows >= _MAX_TILE_ROWS else rows
    # Pad rows up to a whole number of tiles (bounded extra traffic: <2 MiB).
    rows = ((rows + tile_rows - 1) // tile_rows) * tile_rows

    n_pad = rows * cols
    if n_pad != n:
        # 0.5 is a safe, finite filler for clamp/log; padded region is sliced off.
        flat = jnp.pad(flat, (0, n_pad - n), constant_values=0.5)
    x2 = flat.reshape(rows, cols)

    grid = (rows // tile_rows,)

    out2 = pl.pallas_call(
        _make_trunc_rev_sigmoid_kernel(eps),
        out_shape=jax.ShapeDtypeStruct((rows, cols), orig_dtype),
        grid=grid,
        in_specs=[pl.BlockSpec((tile_rows, cols), lambda i: (i, 0))],
        out_specs=pl.BlockSpec((tile_rows, cols), lambda i: (i, 0)),
        compiler_params=pltpu.CompilerParams(
            dimension_semantics=("parallel",),
        ),
    )(x2)

    out_flat = out2.reshape(-1)
    if n_pad != n:
        out_flat = out_flat[:n]
    return out_flat.reshape(orig_shape)


class TruncRevSigmoid:
    """JAX/Pallas port of the PyTorch TruncRevSigmoid module (no parameters)."""

    def __init__(self, eps=0.01):
        self.eps = eps

    def __call__(self, x):
        return trunc_rev_sigmoid_pallas(x, eps=self.eps)


def _reference(x, eps=0.01):
    xc = jnp.clip(x.astype(jnp.float32), eps, 1.0 - eps)
    return jnp.log(xc / (1.0 - xc)).astype(x.dtype)


if __name__ == "__main__":
    key = jax.random.PRNGKey(0)
    # NCHW input, values in [0, 1] like the texture values this module operates on.
    x = jax.random.uniform(key, (2, 4, 16, 16), dtype=jnp.float32)

    module = TruncRevSigmoid(eps=0.01)
    out = module(x)
    out = jax.block_until_ready(out)

    ref = _reference(x, eps=0.01)
    assert out.shape == x.shape and out.dtype == x.dtype
    assert jnp.allclose(out, ref, atol=1e-5, rtol=1e-5)

    # Quick sanity check on a shape that exercises padding + multiple grid steps.
    x_big = jax.random.uniform(jax.random.PRNGKey(1), (3, 5, 333, 77), dtype=jnp.float32)
    out_big = jax.block_until_ready(module(x_big))
    assert jnp.allclose(out_big, _reference(x_big, eps=0.01), atol=1e-5, rtol=1e-5)

    print("KERNEL_OK")
</pallas_src>

<mosaic_0001>
module attributes {stable_mosaic.version = 11 : i64} {
  func.func @kernel(%arg0: i32, %arg1: memref<8x1024xf32, #tpu.memory_space<vmem>>, %arg2: memref<8x1024xf32, #tpu.memory_space<vmem>>) attributes {dimension_semantics = [#tpu.dimension_semantics<parallel>], iteration_bounds = array<i64: 1>, scalar_prefetch = 0 : i64, scratch_operands = 0 : i64, tpu.core_type = #tpu.core_type<tc>, window_params = [{transform_indices = @transform_0, window_bounds = array<i64: 8, 1024>}, {transform_indices = @transform_1, window_bounds = array<i64: 8, 1024>}]} {
    %c0 = arith.constant 0 : index
    %c0_0 = arith.constant 0 : index
    %0 = vector.load %arg1[%c0, %c0_0] : memref<8x1024xf32, #tpu.memory_space<vmem>>, vector<8x1024xf32>
    %cst = arith.constant 0.00999999977 : f32
    %cst_1 = arith.constant 9.900000e-01 : f32
    %1 = vector.broadcast %cst : f32 to vector<8x1024xf32>
    %2 = arith.maximumf %1, %0 : vector<8x1024xf32>
    %3 = vector.broadcast %cst_1 : f32 to vector<8x1024xf32>
    %4 = arith.minimumf %3, %2 : vector<8x1024xf32>
    %cst_2 = arith.constant 1.000000e+00 : f32
    %5 = vector.broadcast %cst_2 : f32 to vector<8x1024xf32>
    %6 = arith.subf %5, %4 : vector<8x1024xf32>
    %7 = arith.divf %4, %6 : vector<8x1024xf32>
    %8 = math.log %7 : vector<8x1024xf32>
    %c0_3 = arith.constant 0 : index
    %c0_4 = arith.constant 0 : index
    %9 = vector.load %arg2[%c0_3, %c0_4] : memref<8x1024xf32, #tpu.memory_space<vmem>>, vector<8x1024xf32>
    tpu.vector_store %arg2[%c0_3, %c0_4], %8 {strides = array<i32>} : memref<8x1024xf32, #tpu.memory_space<vmem>>, vector<8x1024xf32>,
    return
  }
  func.func @transform_0(%arg0: i32) -> (i32, i32) {
    %c0_i32 = arith.constant 0 : i32
    %c0_i32_0 = arith.constant 0 : i32
    return %arg0, %c0_i32 : i32, i32
  }
  func.func @transform_1(%arg0: i32) -> (i32, i32) {
    %c0_i32 = arith.constant 0 : i32
    %c0_i32_0 = arith.constant 0 : i32
    return %arg0, %c0_i32 : i32, i32
  }
}

</mosaic_0001>

<bundles_post_ra>
// kernel: tpu_custom_call.1
= control target key start
LH: loop header
LB: loop body
LE: loop exit
PB: predicated region body
PF: predicated region fallthrough
CT: control target
= control target key end

     0   :  { %6 = vsyncpa [#allocation3], 0  ;;  %s204_s0 = inlined_call_operand.hbm [shape: f32[8,1024], index: 0, kind: input, shape index: {}]   ;;  %s205_s1 = inlined_call_operand.hbm [shape: f32[8,1024], index: 1, kind: output, shape index: {}]  }
   0x1   :  { %7 = vsyncpa [#allocation4], 0  ;;  %s186_s6 = smov [#allocation2]  }
   0x2   :  { %s14_s7 = sshll.u32 %s186_s6, 4  ;;  %s15_s7 = int_to_ptr.vmem [resolvable:$true] %s14_s7 }
   0x3   :  { %s150_s8 = scalar_lea.vmem %s15_s7, 1024  ;;  %p155_p1 = scmp.lt.s32.totalorder %s15_s7, %s15_s7 }
   0x4   :  { %p151_p0 = scmp.ne.s32.totalorder %s15_s7, %s150_s8  ;;  %p156_p2 = scmp.lt.s32.totalorder %s150_s8, %s150_s8 }
   0x6   :  { %p157_p3 = por %p156_p2, %p155_p1 }
   0x8   :  { %p158_p4 = pnand %p157_p3, %p151_p0 }
   0xa   :  { %161 = shalt.err (!%p158_p4)
}
   0xb   :  { %17 = dma.hbm_to_vmem [thread:$0]  %s204_s0, 1024, %s15_s7, [#allocation3]  }
   0xc   :  { %182 = dma.done.wait [#allocation3], 1024  }
   0xd   :  { %183 = vsyncadd [#allocation3], 4294966272  ;;  %v21_v0 = vld [vmem:[#allocation2] sm:$0xff]  ;;  %v22_v1 = vld [vmem:[#allocation2 + $0x8] sm:$0xff]  ;;  %s187_s0 = smov [#allocation5]  }
   0xe   :  { %v23_v2 = vld [vmem:[#allocation2 + $0x10] sm:$0xff]  ;;  %v29_v3 = vmax.f32 %v21_v0, 0.01  ;;  %v30_v4 = vmax.f32 %v22_v1, 0.01  ;;  %v24_v6 = vld [vmem:[#allocation2 + $0x18] sm:$0xff] }
   0xf   :  { %v31_v5 = vmax.f32 %v23_v2, 0.01  ;;  %v25_v7 = vld [vmem:[#allocation2 + $0x20] sm:$0xff]  ;;  %v26_v8 = vld [vmem:[#allocation2 + $0x28] sm:$0xff]  ;;  %v32_v12 = vmax.f32 %v24_v6, 0.01 }
  0x10   :  { %v37_v9 = vmin.f32 %v29_v3, 0.99  ;;  %v38_v10 = vmin.f32 %v30_v4, 0.99  ;;  %v33_v13 = vmax.f32 %v25_v7, 0.01 }
  0x11   :  { %v39_v11 = vmin.f32 %v31_v5, 0.99  ;;  %v34_v14 = vmax.f32 %v26_v8, 0.01  ;;  %v27_v18 = vld [vmem:[#allocation2 + $0x30] sm:$0xff]  ;;  %v28_v19 = vld [vmem:[#allocation2 + $0x38] sm:$0xff] }
  0x12   :  { %v45_v15 = vsub.f32 1.0, %v37_v9  ;;  %v46_v16 = vsub.f32 1.0, %v38_v10  ;;  %v40_v20 = vmin.f32 %v32_v12, 0.99  ;;  %v41_v21 = vmin.f32 %v33_v13, 0.99 }
  0x13   :  { %v47_v17 = vsub.f32 1.0, %v39_v11  ;;  %v42_v22 = vmin.f32 %v34_v14, 0.99  ;;  %v35_v23 = vmax.f32 %v27_v18, 0.01  ;;  %s99_s11 = sshll.u32 %s187_s0, 4  ;;  %s100_s11 = int_to_ptr.vmem [resolvable:$true] %s99_s11 }
  0x14   :  { %110 = vrcp.f32 %v45_v15  ;;  %v36_v24 = vmax.f32 %v28_v19, 0.01  ;;  %v48_v25 = vsub.f32 1.0, %v40_v20  ;;  %v49_v26 = vsub.f32 1.0, %v41_v21  ;;  %s162_s12 = scalar_lea.vmem %s100_s11, 1024  ;;  %p167_p6 = scmp.lt.s32.totalorder %s100_s11, %s100_s11 }
  0x15   :  { %112 = vrcp.f32 %v46_v16  ;;  %v50_v27 = vsub.f32 1.0, %v42_v22  ;;  %v43_v28 = vmin.f32 %v35_v23, 0.99  ;;  %p163_p5 = scmp.ne.s32.totalorder %s100_s11, %s162_s12  ;;  %p168_p7 = scmp.lt.s32.totalorder %s162_s12, %s162_s12 }
  0x16   :  { %114 = vrcp.f32 %v47_v17  ;;  %v44_v29 = vmin.f32 %v36_v24, 0.99 }
  0x17   :  { %116 = vrcp.f32 %v48_v25  ;;  %v51_v30 = vsub.f32 1.0, %v43_v28  ;;  %p169_p8 = por %p168_p7, %p167_p6 }
  0x18   :  { %118 = vrcp.f32 %v49_v26  ;;  %v52_v31 = vsub.f32 1.0, %v44_v29 }
  0x19   :  { %120 = vrcp.f32 %v50_v27  ;;  %p170_p9 = pnand %p169_p8, %p163_p5 }
  0x1a   :  { %122 = vrcp.f32 %v51_v30 }
  0x1b   :  { %124 = vrcp.f32 %v52_v31 }
  0x21   :  { %v111_v32 = vpop.eup %110 }
  0x22   :  { %v113_v33 = vpop.eup %112  ;;  %v54_v34 = vmul.f32 %v111_v32, %v37_v9 }
  0x23   :  { %v115_v35 = vpop.eup %114  ;;  %v56_v36 = vmul.f32 %v113_v33, %v38_v10 }
  0x24   :  { %v117_v37 = vpop.eup %116  ;;  %126 = vlog2.f32 %v54_v34  ;;  %v58_v38 = vmul.f32 %v115_v35, %v39_v11 }
  0x25   :  { %v119_v39 = vpop.eup %118  ;;  %128 = vlog2.f32 %v56_v36  ;;  %v60_v40 = vmul.f32 %v117_v37, %v40_v20 }
  0x26   :  { %v121_v41 = vpop.eup %120  ;;  %130 = vlog2.f32 %v58_v38  ;;  %v62_v42 = vmul.f32 %v119_v39, %v41_v21 }
  0x27   :  { %v123_v43 = vpop.eup %122  ;;  %132 = vlog2.f32 %v60_v40  ;;  %v64_v44 = vmul.f32 %v121_v41, %v42_v22 }
  0x28   :  { %v125_v45 = vpop.eup %124  ;;  %134 = vlog2.f32 %v62_v42  ;;  %v66_v46 = vmul.f32 %v123_v43, %v43_v28 }
  0x29   :  { %136 = vlog2.f32 %v64_v44  ;;  %v68_v47 = vmul.f32 %v125_v45, %v44_v29 }
  0x2a   :  { %138 = vlog2.f32 %v66_v46 }
  0x2b   :  { %140 = vlog2.f32 %v68_v47 }
  0x31   :  { %v127_v48 = vpop.eup %126 }
  0x32   :  { %v129_v49 = vpop.eup %128  ;;  %v70_v50 = vmul.f32 0.6931472, %v127_v48 }
  0x33   :  { %v131_v51 = vpop.eup %130  ;;  %v72_v52 = vmul.f32 0.6931472, %v129_v49 }
  0x34   :  { %v133_v53 = vpop.eup %132  ;;  %85 = vst [vmem:[#allocation5] sm:$0xff] %v70_v50  ;;  %v74_v54 = vmul.f32 0.6931472, %v131_v51 }
  0x35   :  { %v135_v55 = vpop.eup %134  ;;  %86 = vst [vmem:[#allocation5 + $0x8] sm:$0xff] %v72_v52  ;;  %v76_v56 = vmul.f32 0.6931472, %v133_v53 }
  0x36   :  { %v137_v57 = vpop.eup %136  ;;  %87 = vst [vmem:[#allocation5 + $0x10] sm:$0xff] %v74_v54  ;;  %v78_v58 = vmul.f32 0.6931472, %v135_v55 }
  0x37   :  { %v139_v59 = vpop.eup %138  ;;  %88 = vst [vmem:[#allocation5 + $0x18] sm:$0xff] %v76_v56  ;;  %v80_v60 = vmul.f32 0.6931472, %v137_v57 }
  0x38   :  { %v141_v61 = vpop.eup %140  ;;  %89 = vst [vmem:[#allocation5 + $0x20] sm:$0xff] %v78_v58  ;;  %v82_v62 = vmul.f32 0.6931472, %v139_v59 }
  0x39   :  { %90 = vst [vmem:[#allocation5 + $0x28] sm:$0xff] %v80_v60  ;;  %v84_v63 = vmul.f32 0.6931472, %v141_v61 }
  0x3a   :  { %91 = vst [vmem:[#allocation5 + $0x30] sm:$0xff] %v82_v62 }
  0x3b   :  { %92 = vst [vmem:[#allocation5 + $0x38] sm:$0xff] %v84_v63 }
  0x3c   :  { %173 = shalt.err (!%p170_p9)
}
  0x3d   :  { %102 = dma.vmem_to_hbm [thread:$0]  %s100_s11, 1024, %s205_s1, [#allocation4]  }
  0x3e   :  { %184 = dma.done.wait [#allocation4], 1024  }
  0x3f   :  { %185 = vsyncadd [#allocation4], 4294966272 }
  0x40   :  { %106 = vsyncpa [#allocation3], 1 }
  0x41   :  { %107 = vsyncpa [#allocation4], 1 }

</bundles_post_ra>
